<compile_context>
chip_gen: v7x
topology: tpu7x:2x2x1
jax: 0.10.0
libtpu: 0.0.40
codegen_flags: <defaults>
</compile_context>

<pallas_src>
import jax
import jax.numpy as jnp
from jax.experimental import pallas as pl
from jax.experimental.pallas import tpu as pltpu

NINPUT, NEMBED, NHIDDEN, NLAYERS = 64, 32, 32, 2
BATCH, SEQ = 8, 4
LANES = 128          # TPU vreg lane width; every slab block is padded to this


# ------------------------------------------------------------ slab layout ---
def _slab_offsets(ninput, nlayers):
    """Static row offsets inside the packed (R, 128) weight slab."""
    nbias = 1 + 3 * nlayers                 # fc_b + per-layer [i, o, g] biases
    nbias_pad = ((nbias + 7) // 8) * 8      # keep weight blocks 8-row aligned
    off_fcw = 0                             # (ninput, 128)  FC weight (x @ W)
    off_bias = ninput                       # (nbias_pad, 128) bias rows
    off_w = off_bias + nbias_pad            # per layer: 3 x (in_dim, 128) gate W
    return off_fcw, off_bias, off_w, nbias_pad


# ------------------------------------------------------------------ kernel --
def _make_fused_kernel(nlayers, ninput, nembed, nhidden):
    """Fused FC+ReLU -> nlayers x (single-step LSTM, zero init state)."""
    H = nhidden
    off_fcw, off_bias, off_w0, nbias_pad = _slab_offsets(ninput, nlayers)

    def kernel(x_ref, slab_ref, out_ref):
        x = x_ref[...]                                         # (B, ninput)

        # One aligned load of the whole bias block; rows sliced from the array.
        biases = slab_ref[pl.ds(off_bias, nbias_pad), :]       # (8, 128)

        # ---- image encoder: FC(ninput, nembed) + ReLU ----------------------
        fcw = slab_ref[pl.ds(off_fcw, ninput), :]              # (ninput, 128)
        emb = jnp.dot(x, fcw, preferred_element_type=jnp.float32)
        emb = jnp.maximum(emb + biases[0:1, :], 0.0)           # cols>=nembed are 0

        # ---- stacked LSTM, one time step, h0 = c0 = 0 ----------------------
        layer_in, in_dim = emb, nembed
        w_off = off_w0
        hs, cs = [], []
        for l in range(nlayers):
            xin = layer_in[:, :in_dim]                         # (B, in_dim)
            z = []
            for g in range(3):                                 # gate order: i, o, g
                w = slab_ref[pl.ds(w_off + g * in_dim, in_dim), :]   # (in_dim, 128)
                b = biases[1 + 3 * l + g: 2 + 3 * l + g, :]          # (1, 128)
                z.append(jnp.dot(xin, w,
                                 preferred_element_type=jnp.float32) + b)
            i_gate = jax.nn.sigmoid(z[0])                      # each (B, 128),
            o_gate = jax.nn.sigmoid(z[1])                      # lane-aligned at 0
            g_gate = jnp.tanh(z[2])
            c = i_gate * g_gate                                # c = f*c0 + i*g, c0==0
            h = o_gate * jnp.tanh(c)                           # padded lanes -> 0
            hs.append(h[:, :H])
            cs.append(c[:, :H])
            w_off += 3 * in_dim
            layer_in, in_dim = h, H     # nn.LSTM inter-layer dropout: identity (eval)

        # lane-dense (B, 2*nlayers*H) = (8, 128) store: [h_0 | h_1 | c_0 | c_1]
        out_ref[...] = jnp.concatenate(hs + cs, axis=-1).astype(out_ref.dtype)

    return kernel


# ----------------------------------------------------------------- wrapper --
def img_encoder_structure_forward(feat, slab):
    """feat: (SEQ, B, NINPUT); slab: packed (R, 128) weights.
    Returns (output, (h_n, c_n)) like the PyTorch module."""
    S, B, N = feat.shape
    H, nlayers = NHIDDEN, NLAYERS

    hc = pl.pallas_call(
        _make_fused_kernel(nlayers, N, NEMBED, H),
        out_shape=jax.ShapeDtypeStruct((B, 2 * nlayers * H), jnp.float32),
        grid=(1,),
        in_specs=[
            # Only seq step 0 is consumed by the module -> DMA just that block,
            # squeezed so the kernel ref is already (B, NINPUT).
            pl.BlockSpec((pl.Squeezed(), B, N), lambda i: (0, 0, 0)),
            # Single packed weight slab: one full-array DMA into VMEM.
            pl.BlockSpec(slab.shape, lambda i: (0, 0)),
        ],
        out_specs=pl.BlockSpec((B, 2 * nlayers * H), lambda i: (0, 0)),
        compiler_params=pltpu.CompilerParams(
            dimension_semantics=("arbitrary",)),
    )(feat, slab)

    # Layout plumbing only: split the lane-dense tile back into module outputs.
    h_n = jnp.stack([hc[:, l * H:(l + 1) * H] for l in range(nlayers)])
    c_n = jnp.stack([hc[:, (nlayers + l) * H:(nlayers + l + 1) * H]
                     for l in range(nlayers)])
    output = h_n[-1][None]          # (1, B, H): LSTM output for the length-1 seq
    return output, (h_n, c_n)


# ------------------------------------------------------------- parameters ---
def init_params(key):
    """PyTorch-layout params: Linear (out,in)+(out,); LSTM weight_ih (4H,in),
    weight_hh (4H,H), bias_ih/bias_hh (4H,), gate order [i, f, g, o]."""
    ks = jax.random.split(key, 2 + 4 * NLAYERS)
    p = {"fc_w": 0.05 * jax.random.normal(ks[0], (NEMBED, NINPUT), jnp.float32),
         "fc_b": 0.05 * jax.random.normal(ks[1], (NEMBED,), jnp.float32),
         "lstm": []}
    for l in range(NLAYERS):
        in_dim = NEMBED if l == 0 else NHIDDEN
        kwi, kwh, kbi, kbh = ks[2 + 4 * l:2 + 4 * (l + 1)]
        p["lstm"].append({
            "w_ih": 0.05 * jax.random.normal(kwi, (4 * NHIDDEN, in_dim), jnp.float32),
            "w_hh": 0.05 * jax.random.normal(kwh, (4 * NHIDDEN, NHIDDEN), jnp.float32),
            "b_ih": 0.05 * jax.random.normal(kbi, (4 * NHIDDEN,), jnp.float32),
            "b_hh": 0.05 * jax.random.normal(kbh, (4 * NHIDDEN,), jnp.float32),
        })
    return p


def pack_params_for_kernel(params):
    """One-time repack (model-load time): transpose FC, drop the dead forget
    gate, give every gate its own 128-lane-aligned weight block, pre-sum the
    two LSTM biases, and concatenate everything into one (R, 128) f32 slab.
    Exact for this module's seq_len==1, zero-initial-state forward."""
    H = NHIDDEN

    def pad_cols(a):                       # (r, c) -> (r, 128), zero pad
        return jnp.pad(a.astype(jnp.float32), ((0, 0), (0, LANES - a.shape[1])))

    def pad_row(v):                        # (c,) -> (1, 128), zero pad
        return jnp.pad(v.astype(jnp.float32), (0, LANES - v.shape[0]))[None, :]

    blocks = [pad_cols(params["fc_w"].T)]                    # (NINPUT, 128)

    bias_rows = [pad_row(params["fc_b"])]
    for lp in params["lstm"]:
        b = lp["b_ih"] + lp["b_hh"]
        bias_rows += [pad_row(b[0:H]),                       # i
                      pad_row(b[3 * H:4 * H]),               # o
                      pad_row(b[2 * H:3 * H])]               # g
    bias_blk = jnp.concatenate(bias_rows, axis=0)
    bias_blk = jnp.pad(bias_blk, ((0, (-bias_blk.shape[0]) % 8), (0, 0)))
    blocks.append(bias_blk)                                  # (8, 128)

    for lp in params["lstm"]:
        w = lp["w_ih"]                                       # (4H, in_dim), [i,f,g,o]
        for sl in (slice(0, H), slice(3 * H, 4 * H), slice(2 * H, 3 * H)):
            blocks.append(pad_cols(w[sl].T))                 # (in_dim, 128)

    return jnp.concatenate(blocks, axis=0)                   # (R, 128)


# ------------------------------------------------------------ pure-JAX ref --
def _reference(feat, params):
    """Full PyTorch-formula single-step LSTM (keeps W_hh and forget gate)."""
    H = NHIDDEN
    x = jnp.maximum(feat[0] @ params["fc_w"].T + params["fc_b"], 0.0)
    hs, cs = [], []
    for lp in params["lstm"]:
        h0 = jnp.zeros((x.shape[0], H), jnp.float32)
        c0 = jnp.zeros((x.shape[0], H), jnp.float32)
        gates = (x @ lp["w_ih"].T + lp["b_ih"]
                 + h0 @ lp["w_hh"].T + lp["b_hh"])
        i = jax.nn.sigmoid(gates[:, 0:H])
        f = jax.nn.sigmoid(gates[:, H:2 * H])
        g = jnp.tanh(gates[:, 2 * H:3 * H])
        o = jax.nn.sigmoid(gates[:, 3 * H:4 * H])
        c = f * c0 + i * g
        h = o * jnp.tanh(c)
        hs.append(h)
        cs.append(c)
        x = h
    return x[None], (jnp.stack(hs), jnp.stack(cs))


if __name__ == "__main__":
    key = jax.random.PRNGKey(0)
    k_in, k_par = jax.random.split(key)
    feat = jax.random.normal(k_in, (SEQ, BATCH, NINPUT), jnp.float32)
    params = init_params(k_par)

    # One-time weight repack (would be done once at model-load time).
    slab = pack_params_for_kernel(params)

    fwd = jax.jit(img_encoder_structure_forward)
    output, (h_n, c_n) = fwd(feat, slab)
    jax.block_until_ready((output, h_n, c_n))

    assert output.shape == (1, BATCH, NHIDDEN)
    assert h_n.shape == (NLAYERS, BATCH, NHIDDEN)
    assert c_n.shape == (NLAYERS, BATCH, NHIDDEN)

    ref_out, (ref_h, ref_c) = _reference(feat, params)
    assert jnp.allclose(output, ref_out, atol=1e-5)
    assert jnp.allclose(h_n, ref_h, atol=1e-5)
    assert jnp.allclose(c_n, ref_c, atol=1e-5)

    # TODO(synk): nn.LSTM inter-layer dropout is training-only; modeled as
    # identity (eval-mode forward).
    print("KERNEL_OK")
</pallas_src>

<mosaic_0001>
module attributes {stable_mosaic.version = 11 : i64} {
  func.func @kernel(%arg0: i32, %arg1: memref<1x8x64xf32, #tpu.memory_space<vmem>>, %arg2: memref<264x128xf32, #tpu.memory_space<vmem>>, %arg3: memref<8x128xf32, #tpu.memory_space<vmem>>) attributes {dimension_semantics = [#tpu.dimension_semantics<arbitrary>], iteration_bounds = array<i64: 1>, scalar_prefetch = 0 : i64, scratch_operands = 0 : i64, tpu.core_type = #tpu.core_type<tc>, window_params = [{transform_indices = @transform_0, window_bounds = array<i64: 1, 8, 64>}, {pipeline_mode = #tpu.pipeline_mode<synchronous>, transform_indices = @transform_1, window_bounds = array<i64: 264, 128>}, {pipeline_mode = #tpu.pipeline_mode<synchronous>, transform_indices = @transform_2, window_bounds = array<i64: 8, 128>}]} {
    %c0 = arith.constant 0 : index
    %c0_0 = arith.constant 0 : index
    %c0_1 = arith.constant 0 : index
    %0 = vector.load %arg1[%c0, %c0_0, %c0_1] : memref<1x8x64xf32, #tpu.memory_space<vmem>>, vector<1x8x64xf32>
    %1 = vector.shape_cast %0 : vector<1x8x64xf32> to vector<8x64xf32>
    %c64 = arith.constant 64 : index
    %c0_2 = arith.constant 0 : index
    %2 = vector.load %arg2[%c64, %c0_2] : memref<264x128xf32, #tpu.memory_space<vmem>>, vector<8x128xf32>
    %c0_3 = arith.constant 0 : index
    %c0_4 = arith.constant 0 : index
    %3 = vector.load %arg2[%c0_3, %c0_4] : memref<264x128xf32, #tpu.memory_space<vmem>>, vector<64x128xf32>
    %cst = arith.constant dense<0.000000e+00> : vector<8x128xf32>
    %4 = tpu.matmul %1, %3, %cst {dimension_numbers = #tpu.dot_dimension_numbers<[1], [0], [0], [1], [0, 0, 1, 1], [], []>} : vector<8x64xf32>, vector<64x128xf32>, vector<8x128xf32> -> vector<8x128xf32>
    %5 = vector.extract_strided_slice %2 {offsets = [0, 0], sizes = [1, 128], strides = [1, 1]} : vector<8x128xf32> to vector<1x128xf32>
    %6 = vector.broadcast %5 : vector<1x128xf32> to vector<8x128xf32>
    %7 = arith.addf %4, %6 : vector<8x128xf32>
    %cst_5 = arith.constant 0.000000e+00 : f32
    %8 = vector.broadcast %cst_5 : f32 to vector<8x128xf32>
    %9 = arith.maximumf %7, %8 : vector<8x128xf32>
    %10 = vector.extract_strided_slice %9 {offsets = [0, 0], sizes = [8, 32], strides = [1, 1]} : vector<8x128xf32> to vector<8x32xf32>
    %c72 = arith.constant 72 : index
    %c0_6 = arith.constant 0 : index
    %11 = vector.load %arg2[%c72, %c0_6] : memref<264x128xf32, #tpu.memory_space<vmem>>, vector<32x128xf32>
    %12 = vector.extract_strided_slice %2 {offsets = [1, 0], sizes = [1, 128], strides = [1, 1]} : vector<8x128xf32> to vector<1x128xf32>
    %cst_7 = arith.constant dense<0.000000e+00> : vector<8x128xf32>
    %13 = tpu.matmul %10, %11, %cst_7 {dimension_numbers = #tpu.dot_dimension_numbers<[1], [0], [0], [1], [0, 0, 1, 1], [], []>} : vector<8x32xf32>, vector<32x128xf32>, vector<8x128xf32> -> vector<8x128xf32>
    %14 = vector.broadcast %12 : vector<1x128xf32> to vector<8x128xf32>
    %15 = arith.addf %13, %14 : vector<8x128xf32>
    %c104 = arith.constant 104 : index
    %c0_8 = arith.constant 0 : index
    %16 = vector.load %arg2[%c104, %c0_8] : memref<264x128xf32, #tpu.memory_space<vmem>>, vector<32x128xf32>
    %17 = vector.extract_strided_slice %2 {offsets = [2, 0], sizes = [1, 128], strides = [1, 1]} : vector<8x128xf32> to vector<1x128xf32>
    %cst_9 = arith.constant dense<0.000000e+00> : vector<8x128xf32>
    %18 = tpu.matmul %10, %16, %cst_9 {dimension_numbers = #tpu.dot_dimension_numbers<[1], [0], [0], [1], [0, 0, 1, 1], [], []>} : vector<8x32xf32>, vector<32x128xf32>, vector<8x128xf32> -> vector<8x128xf32>
    %19 = vector.broadcast %17 : vector<1x128xf32> to vector<8x128xf32>
    %20 = arith.addf %18, %19 : vector<8x128xf32>
    %c136 = arith.constant 136 : index
    %c0_10 = arith.constant 0 : index
    %21 = vector.load %arg2[%c136, %c0_10] : memref<264x128xf32, #tpu.memory_space<vmem>>, vector<32x128xf32>
    %22 = vector.extract_strided_slice %2 {offsets = [3, 0], sizes = [1, 128], strides = [1, 1]} : vector<8x128xf32> to vector<1x128xf32>
    %cst_11 = arith.constant dense<0.000000e+00> : vector<8x128xf32>
    %23 = tpu.matmul %10, %21, %cst_11 {dimension_numbers = #tpu.dot_dimension_numbers<[1], [0], [0], [1], [0, 0, 1, 1], [], []>} : vector<8x32xf32>, vector<32x128xf32>, vector<8x128xf32> -> vector<8x128xf32>
    %24 = vector.broadcast %22 : vector<1x128xf32> to vector<8x128xf32>
    %25 = arith.addf %23, %24 : vector<8x128xf32>
    %26 = arith.negf %15 : vector<8x128xf32>
    %27 = math.exp %26 : vector<8x128xf32>
    %cst_12 = arith.constant 1.000000e+00 : f32
    %28 = vector.broadcast %cst_12 : f32 to vector<8x128xf32>
    %29 = arith.addf %28, %27 : vector<8x128xf32>
    %30 = arith.divf %28, %29 : vector<8x128xf32>
    %31 = arith.negf %20 : vector<8x128xf32>
    %32 = math.exp %31 : vector<8x128xf32>
    %cst_13 = arith.constant 1.000000e+00 : f32
    %33 = vector.broadcast %cst_13 : f32 to vector<8x128xf32>
    %34 = arith.addf %33, %32 : vector<8x128xf32>
    %35 = arith.divf %33, %34 : vector<8x128xf32>
    %36 = math.tanh %25 : vector<8x128xf32>
    %37 = arith.mulf %30, %36 : vector<8x128xf32>
    %38 = math.tanh %37 : vector<8x128xf32>
    %39 = arith.mulf %35, %38 : vector<8x128xf32>
    %40 = vector.extract_strided_slice %39 {offsets = [0, 0], sizes = [8, 32], strides = [1, 1]} : vector<8x128xf32> to vector<8x32xf32>
    %41 = vector.extract_strided_slice %37 {offsets = [0, 0], sizes = [8, 32], strides = [1, 1]} : vector<8x128xf32> to vector<8x32xf32>
    %42 = vector.extract_strided_slice %39 {offsets = [0, 0], sizes = [8, 32], strides = [1, 1]} : vector<8x128xf32> to vector<8x32xf32>
    %c168 = arith.constant 168 : index
    %c0_14 = arith.constant 0 : index
    %43 = vector.load %arg2[%c168, %c0_14] : memref<264x128xf32, #tpu.memory_space<vmem>>, vector<32x128xf32>
    %44 = vector.extract_strided_slice %2 {offsets = [4, 0], sizes = [1, 128], strides = [1, 1]} : vector<8x128xf32> to vector<1x128xf32>
    %cst_15 = arith.constant dense<0.000000e+00> : vector<8x128xf32>
    %45 = tpu.matmul %42, %43, %cst_15 {dimension_numbers = #tpu.dot_dimension_numbers<[1], [0], [0], [1], [0, 0, 1, 1], [], []>} : vector<8x32xf32>, vector<32x128xf32>, vector<8x128xf32> -> vector<8x128xf32>
    %46 = vector.broadcast %44 : vector<1x128xf32> to vector<8x128xf32>
    %47 = arith.addf %45, %46 : vector<8x128xf32>
    %c200 = arith.constant 200 : index
    %c0_16 = arith.constant 0 : index
    %48 = vector.load %arg2[%c200, %c0_16] : memref<264x128xf32, #tpu.memory_space<vmem>>, vector<32x128xf32>
    %49 = vector.extract_strided_slice %2 {offsets = [5, 0], sizes = [1, 128], strides = [1, 1]} : vector<8x128xf32> to vector<1x128xf32>
    %cst_17 = arith.constant dense<0.000000e+00> : vector<8x128xf32>
    %50 = tpu.matmul %42, %48, %cst_17 {dimension_numbers = #tpu.dot_dimension_numbers<[1], [0], [0], [1], [0, 0, 1, 1], [], []>} : vector<8x32xf32>, vector<32x128xf32>, vector<8x128xf32> -> vector<8x128xf32>
    %51 = vector.broadcast %49 : vector<1x128xf32> to vector<8x128xf32>
    %52 = arith.addf %50, %51 : vector<8x128xf32>
    %c232 = arith.constant 232 : index
    %c0_18 = arith.constant 0 : index
    %53 = vector.load %arg2[%c232, %c0_18] : memref<264x128xf32, #tpu.memory_space<vmem>>, vector<32x128xf32>
    %54 = vector.extract_strided_slice %2 {offsets = [6, 0], sizes = [1, 128], strides = [1, 1]} : vector<8x128xf32> to vector<1x128xf32>
    %cst_19 = arith.constant dense<0.000000e+00> : vector<8x128xf32>
    %55 = tpu.matmul %42, %53, %cst_19 {dimension_numbers = #tpu.dot_dimension_numbers<[1], [0], [0], [1], [0, 0, 1, 1], [], []>} : vector<8x32xf32>, vector<32x128xf32>, vector<8x128xf32> -> vector<8x128xf32>
    %56 = vector.broadcast %54 : vector<1x128xf32> to vector<8x128xf32>
    %57 = arith.addf %55, %56 : vector<8x128xf32>
    %58 = arith.negf %47 : vector<8x128xf32>
    %59 = math.exp %58 : vector<8x128xf32>
    %cst_20 = arith.constant 1.000000e+00 : f32
    %60 = vector.broadcast %cst_20 : f32 to vector<8x128xf32>
    %61 = arith.addf %60, %59 : vector<8x128xf32>
    %62 = arith.divf %60, %61 : vector<8x128xf32>
    %63 = arith.negf %52 : vector<8x128xf32>
    %64 = math.exp %63 : vector<8x128xf32>
    %cst_21 = arith.constant 1.000000e+00 : f32
    %65 = vector.broadcast %cst_21 : f32 to vector<8x128xf32>
    %66 = arith.addf %65, %64 : vector<8x128xf32>
    %67 = arith.divf %65, %66 : vector<8x128xf32>
    %68 = math.tanh %57 : vector<8x128xf32>
    %69 = arith.mulf %62, %68 : vector<8x128xf32>
    %70 = math.tanh %69 : vector<8x128xf32>
    %71 = arith.mulf %67, %70 : vector<8x128xf32>
    %72 = vector.extract_strided_slice %71 {offsets = [0, 0], sizes = [8, 32], strides = [1, 1]} : vector<8x128xf32> to vector<8x32xf32>
    %73 = vector.extract_strided_slice %69 {offsets = [0, 0], sizes = [8, 32], strides = [1, 1]} : vector<8x128xf32> to vector<8x32xf32>
    %74 = tpu.concatenate %40, %72, %41, %73 in 1 : vector<8x32xf32>, vector<8x32xf32>, vector<8x32xf32>, vector<8x32xf32> -> vector<8x128xf32>
    %c0_22 = arith.constant 0 : index
    %c0_23 = arith.constant 0 : index
    %75 = vector.load %arg3[%c0_22, %c0_23] : memref<8x128xf32, #tpu.memory_space<vmem>>, vector<8x128xf32>
    tpu.vector_store %arg3[%c0_22, %c0_23], %74 {strides = array<i32>} : memref<8x128xf32, #tpu.memory_space<vmem>>, vector<8x128xf32>,
    return
  }
  func.func @transform_0(%arg0: i32) -> (i32, i32, i32) {
    %c0_i32 = arith.constant 0 : i32
    %c0_i32_0 = arith.constant 0 : i32
    %c0_i32_1 = arith.constant 0 : i32
    %c0_i32_2 = arith.constant 0 : i32
    return %c0_i32, %c0_i32_0, %c0_i32_1 : i32, i32, i32
  }
  func.func @transform_1(%arg0: i32) -> (i32, i32) {
    %c0_i32 = arith.constant 0 : i32
    %c0_i32_0 = arith.constant 0 : i32
    %c0_i32_1 = arith.constant 0 : i32
    return %c0_i32, %c0_i32_0 : i32, i32
  }
  func.func @transform_2(%arg0: i32) -> (i32, i32) {
    %c0_i32 = arith.constant 0 : i32
    %c0_i32_0 = arith.constant 0 : i32
    %c0_i32_1 = arith.constant 0 : i32
    return %c0_i32, %c0_i32_0 : i32, i32
  }
}

</mosaic_0001>

<bundles_post_ra>
// kernel: img_encoder_structure_forward.1
= control target key start
LH: loop header
LB: loop body
LE: loop exit
PB: predicated region body
PF: predicated region fallthrough
CT: control target
= control target key end

     0   :  { %7 = vsyncpa [#allocation3], 0  ;;  %s1040_s0 = inlined_call_operand.hbm [shape: f32[4,8,64], index: 0, kind: input, shape index: {}]   ;;  %s1041_s1 = inlined_call_operand.hbm [shape: f32[264,128], index: 1, kind: input, shape index: {}]   ;;  %s1042_s2 = inlined_call_operand.vmem [shape: f32[8,128], index: 2, kind: output, shape index: {}]  }
   0x1   :  { %8 = vsyncpa [#allocation5], 0  ;;  %s921_s9 = smov [#allocation2]   ;;  %s922_s11 = smov [#allocation4]  }
   0x2   :  { %s15_s10 = sshll.u32 %s921_s9, 4  ;;  %s24_s12 = sshll.u32 %s922_s11, 4  ;;  %s16_s10 = int_to_ptr.vmem [resolvable:$true] %s15_s10  ;;  %s946_s12 = int_to_ptr.vmem [resolvable:$true] %s24_s12 }
   0x3   :  { %s873_s15 = scalar_lea.hbm %s1040_s0, 128  ;;  %s875_s20 = scalar_lea.hbm %s1040_s0, 512 }
   0x4   :  { %p874_p0 = scmp.ne.s32.totalorder %s1040_s0, %s873_s15  ;;  %p876_p1 = scmp.lt.u32.totalorder %s875_s20, %s873_s15 }
   0x5   :  { %p877_p2 = scmp.lt.u32.totalorder %s873_s15, %s1040_s0 }
   0x7   :  { %p878_p3 = por %p877_p2, %p876_p1 }
   0x9   :  { %p879_p4 = pnand %p878_p3, %p874_p0 }
   0xb   :  { %882 = shalt.err (!%p879_p4)
}
   0xc   :  { %s883_s23 = scalar_lea.vmem %s16_s10, 128  ;;  %p888_p6 = scmp.lt.s32.totalorder %s16_s10, %s16_s10 }
   0xd   :  { %p884_p5 = scmp.ne.s32.totalorder %s16_s10, %s883_s23  ;;  %p889_p7 = scmp.lt.s32.totalorder %s883_s23, %s883_s23 }
   0xf   :  { %p890_p8 = por %p889_p7, %p888_p6 }
  0x11   :  { %p891_p9 = pnand %p890_p8, %p884_p5 }
  0x13   :  { %894 = shalt.err (!%p891_p9)
}
  0x14   :  { %18 = dma.hbm_to_vmem [thread:$0]  %s1040_s0, 128, %s16_s10, [#allocation3]  }
  0x15   :  { %s895_s28 = scalar_lea.hbm %s1041_s1, 4224 }
  0x16   :  { %p896_p10 = scmp.ne.s32.totalorder %s1041_s1, %s895_s28  ;;  %p899_p11 = scmp.lt.u32.totalorder %s895_s28, %s1041_s1 }
  0x18   :  { %p901_p12 = pnand %p899_p11, %p896_p10 }
  0x1a   :  { %904 = shalt.err (!%p901_p12)
}
  0x1b   :  { %s905_s5 = scalar_lea.vmem %s946_s12, 4224  ;;  %p910_p0 = scmp.lt.s32.totalorder %s946_s12, %s946_s12 }
  0x1c   :  { %p906_p13 = scmp.ne.s32.totalorder %s946_s12, %s905_s5  ;;  %p911_p1 = scmp.lt.s32.totalorder %s905_s5, %s905_s5 }
  0x1e   :  { %p912_p2 = por %p911_p1, %p910_p0 }
  0x20   :  { %p913_p3 = pnand %p912_p2, %p906_p13 }
  0x22   :  { %916 = shalt.err (!%p913_p3)
}
  0x23   :  { %s923_s0 = smov 128   ;;  %s924_s6 = smov 8  }
  0x24   :  { %30 = dma.hbm_to_vmem [thread:$0]  %s1041_s1, 4224, %s946_s12, [#allocation5], %s923_s0, %s923_s0, %s924_s6  }
  0x25   :  { %917 = dma.done.wait [#allocation3], 128  }
  0x26   :  { %918 = vsyncadd [#allocation3], 4294967168 }
  0x27   :  { %919 = dma.done.wait [#allocation5], 4224  }
  0x28   :  { %920 = vsyncadd [#allocation5], 4294963072  ;;  %v925_v0 = vmov 0.0|0.0   ;;  %vm926_vm0 = vmmov 0   ;;  %v927_v1 = vmov 0.0   ;;  %v39_v2 = vld [vmem:[#allocation4] sm:$0xff]  ;;  %v47_v27 = vlaneseq }
  0x29   :  { %791 = vmatprep.subr.bf16.mxu0 %v925_v0  ;;  %722 = vmatprep.mubr.msk.f32.mxu0 %vm926_vm0, %v927_v1  ;;  %v40_v3 = vld [vmem:[#allocation4 + $0x8] sm:$0xff]  ;;  %v41_v4 = vld [vmem:[#allocation4 + $0x10] sm:$0xff]  ;;  %v42_v6 = vld [vmem:[#allocation4 + $0x18] sm:$0xff]  ;;  %vm51_vm1 = vcmask 523264   ;;  %vm134_vm2 = vcmask 261120   ;;  %s928_s1 = smov 96  }
  0x2a   :  { %803 = vmatprep.subr.bf16.mxu1 %v925_v0  ;;  %733 = vmatprep.mubr.msk.f32.mxu1 %vm926_vm0, %v927_v1  ;;  %v792_v5 = vpack.c.bf16 %v40_v3, %v39_v2  ;;  %v795_v7 = vpack.c.bf16 %v42_v6, %v41_v4  ;;  %v126_v8 = vld [vmem:[#allocation4 + $0x48] sm:$0xff]  ;;  %v127_v9 = vld [vmem:[#allocation4 + $0x50] sm:$0xff]  ;;  %v43_v10 = vld [vmem:[#allocation4 + $0x20] sm:$0xff]  ;;  %v997_v28 = vshrl.u32 %v47_v27, 7  ;;  %s929_s9 = smov 32   ;;  %s930_s10 = smov 64  }
  0x2b   :  { %v44_v11 = vld [vmem:[#allocation4 + $0x28] sm:$0xff]  ;;  %v804_v12 = vpack.c.bf16 %v127_v9, %v126_v8  ;;  %v45_v14 = vld [vmem:[#allocation4 + $0x30] sm:$0xff]  ;;  %v46_v15 = vld [vmem:[#allocation4 + $0x38] sm:$0xff]  ;;  %vm647_vm3 = vcmask 785408  }
  0x2c   :  { %793 = vmatpush3.bf16.msra.mxu0 %v792_v5  ;;  %v798_v13 = vpack.c.bf16 %v44_v11, %v43_v10  ;;  %v801_v16 = vpack.c.bf16 %v46_v15, %v45_v14  ;;  %v286_v17 = vld [vmem:[#allocation4 + $0x88] sm:$0xff]  ;;  %v287_v18 = vld [vmem:[#allocation4 + $0x90] sm:$0xff]  ;;  %v37_v19 = vld [vmem:[#allocation2] sm:$0xff]  ;;  %v49_v29 = vsub.s32 0, %v997_v28  ;;  %v132_v54 = vsub.s32 1, %v997_v28 }
  0x2d   :  { %794 = vmatprep.subr.bf16.mxu0 %v925_v0  ;;  %805 = vmatpush3.bf16.msra.mxu1 %v804_v12  ;;  %v816_v20 = vpack.c.bf16 %v287_v18, %v286_v17  ;;  %v128_v21 = vld [vmem:[#allocation4 + $0x58] sm:$0xff]  ;;  %v129_v22 = vld [vmem:[#allocation4 + $0x60] sm:$0xff]  ;;  %v208_v32 = vld [vmem:[#allocation4 + $0x68] sm:$0xff]  ;;  %v214_v61 = vsub.s32 2, %v997_v28  ;;  %v292_v63 = vsub.s32 3, %v997_v28  ;;  %v467_v27 = vsub.s32 5, %v997_v28 }
  0x2e   :  { %806 = vmatprep.subr.bf16.mxu1 %v925_v0  ;;  %v807_v23 = vpack.c.bf16 %v129_v22, %v128_v21  ;;  %v288_v24 = vld [vmem:[#allocation4 + $0x98] sm:$0xff]  ;;  %v289_v25 = vld [vmem:[#allocation4 + $0xa0] sm:$0xff]  ;;  %v209_v33 = vld [vmem:[#allocation4 + $0x70] sm:$0xff] }
  0x2f   :  { %v819_v26 = vpack.c.bf16 %v289_v25, %v288_v24  ;;  %v1000_v30 = vld [vmem:[#allocation4 + $0x40] sm:$0xff]  ;;  %v810_v37 = vpack.c.bf16 %v209_v33, %v208_v32  ;;  %v210_v39 = vld [vmem:[#allocation4 + $0x78] sm:$0xff]  ;;  %v380_v42 = vld [vmem:[#allocation4 + $0xa8] sm:$0xff]  ;;  %v386_v25 = vsub.s32 4, %v997_v28 }
  0x30   :  { %796 = vmatpush3.bf16.msra.mxu0 %v795_v7  ;;  %v50_v31 = vrot.slane %v1000_v30, %v49_v29  ;;  %v211_v40 = vld [vmem:[#allocation4 + $0x80] sm:$0xff]  ;;  %v381_v43 = vld [vmem:[#allocation4 + $0xb0] sm:$0xff]  ;;  %v461_v44 = vld [vmem:[#allocation4 + $0xc8] sm:$0xff]  ;;  %v133_v55 = vrot.slane %v1000_v30, %v132_v54  ;;  %v215_v2 = vrot.slane %v1000_v30, %v214_v61  ;;  %v293_v4 = vrot.slane %v1000_v30, %v292_v63 }
  0x31   :  { %797 = vmatprep.subr.bf16.mxu0 %v925_v0  ;;  %808 = vmatpush3.bf16.msra.mxu1 %v807_v23  ;;  %v813_v41 = vpack.c.bf16 %v211_v40, %v210_v39  ;;  %v822_v45 = vpack.c.bf16 %v381_v43, %v380_v42  ;;  %v462_v46 = vld [vmem:[#allocation4 + $0xd0] sm:$0xff]  ;;  %v382_v47 = vld [vmem:[#allocation4 + $0xb8] sm:$0xff]  ;;  %v383_v48 = vld [vmem:[#allocation4 + $0xc0] sm:$0xff]  ;;  %v468_v33 = vrot.slane %v1000_v30, %v467_v27 }
  0x32   :  { %809 = vmatprep.subr.bf16.mxu1 %v925_v0  ;;  %v828_v49 = vpack.c.bf16 %v462_v46, %v461_v44  ;;  %v463_v50 = vld [vmem:[#allocation4 + $0xd8] sm:$0xff]  ;;  %v464_v51 = vld [vmem:[#allocation4 + $0xe0] sm:$0xff]  ;;  %v825_v52 = vpack.c.bf16 %v383_v48, %v382_v47  ;;  %v540_v17 = vld [vmem:[#allocation4 + $0xf0] sm:$0xff] }
  0x33   :  { %v831_v53 = vpack.c.bf16 %v464_v51, %v463_v50  ;;  %v541_v22 = vld [vmem:[#allocation4 + $0xf8] sm:$0xff]  ;;  %v542_v23 = vld [vmem:[#allocation4 + $0x100] sm:$0xff] }
  0x34   :  { %799 = vmatpush3.bf16.msra.mxu0 %v798_v13  ;;  %v837_v24 = vpack.c.bf16 %v542_v23, %v541_v22 }
  0x35   :  { %800 = vmatprep.subr.bf16.mxu0 %v925_v0 }
  0x38   :  { %802 = vmatpush3.bf16.msra.mxu0 %v801_v16  ;;  %v539_v16 = vld [vmem:[#allocation4 + $0xe8] sm:$0xff] }
  0x39   :  { %815 = vmatprep.subr.bf16.mxu0 %v925_v0 }
  0x3b   :  { %723 = vmatmul.mubr.msk.f32.vlgmr.msra.gmra.mrb[0].mxu0 %vm51_vm1, %v37_v19 }
  0x3c   :  { %817 = vmatpush3.bf16.msra.mxu0 %v816_v20  ;;  %755 = vmatprep.mubr.msk.f32.mxu0 %vm926_vm0, %v927_v1  ;;  %v834_v20 = vpack.c.bf16 %v540_v17, %v539_v16 }
  0x3d   :  { %818 = vmatprep.subr.bf16.mxu0 %v925_v0 }
  0x40   :  { %820 = vmatpush3.bf16.msra.mxu0 %v819_v26  ;;  %v387_v26 = vrot.slane %v1000_v30, %v386_v25 }
  0x41   :  { %827 = vmatprep.subr.bf16.mxu0 %v925_v0 }
 0x10e   :  { %v121_v34 = vpop.f32.mrb[0].mxu0 }
 0x10f   :  { %v122_v35 = vadd.f32 %v121_v34, %v50_v31  ;;  %v724_v36 = vpop.f32.mrb[1].mxu0 }
 0x111   :  { %v125_v38 = vmax.f32 %v122_v35, 0.0 }
 0x113   :  { %734 = vmatmul.mubr.msk.f32.vlgmr.msra.gmra.mrb[0].mxu1 %vm134_vm2, %v125_v38  ;;  %756 = vmatmul.mubr.msk.f32.vlgmr.msra.gmra.mrb[2].mxu0 %vm134_vm2, %v125_v38 }
 0x114   :  { %811 = vmatpush3.bf16.msra.mxu1 %v810_v37  ;;  %744 = vmatprep.mubr.msk.f32.mxu1 %vm926_vm0, %v927_v1 }
 0x115   :  { %812 = vmatprep.subr.bf16.mxu1 %v925_v0  ;;  %777 = vmatprep.mubr.msk.f32.mxu0 %vm926_vm0, %v927_v1 }
 0x116   :  { %829 = vmatpush3.bf16.msra.mxu0 %v828_v49 }
 0x117   :  { %830 = vmatprep.subr.bf16.mxu0 %v925_v0 }
 0x118   :  { %814 = vmatpush3.bf16.msra.mxu1 %v813_v41 }
 0x119   :  { %821 = vmatprep.subr.bf16.mxu1 %v925_v0 }
 0x11a   :  { %832 = vmatpush3.bf16.msra.mxu0 %v831_v53 }
 0x11b   :  { %745 = vmatmul.mubr.msk.f32.vlgmr.msra.gmra.mrb[2].mxu1 %vm134_vm2, %v125_v38 }
 0x11c   :  { %766 = vmatprep.mubr.msk.f32.mxu1 %vm926_vm0, %v927_v1  ;;  %823 = vmatpush3.bf16.msra.mxu1 %v822_v45 }
 0x11d   :  { %824 = vmatprep.subr.bf16.mxu1 %v925_v0 }
 0x120   :  { %826 = vmatpush3.bf16.msra.mxu1 %v825_v52 }
 0x121   :  { %833 = vmatprep.subr.bf16.mxu1 %v925_v0 }
 0x1e6   :  { %v204_v56 = vpop.f32.mrb[0].mxu1  ;;  %v360_v57 = vpop.f32.mrb[2].mxu0 }
 0x1e7   :  { %v205_v58 = vadd.f32 %v204_v56, %v133_v55  ;;  %v735_v59 = vpop.f32.mrb[1].mxu1  ;;  %v757_v60 = vpop.f32.mrb[3].mxu0  ;;  %v361_v8 = vadd.f32 %v360_v57, %v293_v4 }
 0x1e9   :  { %v660_v62 = vmul.f32 -1.442695, %v205_v58 }
 0x1eb   :  { %849 = vpow2.f32 %v660_v62 }
 0x1ee   :  { %v282_v3 = vpop.f32.mrb[2].mxu1 }
 0x1ef   :  { %v283_v5 = vadd.f32 %v282_v3, %v215_v2  ;;  %v746_v6 = vpop.f32.mrb[3].mxu1 }
 0x1f1   :  { %v661_v7 = vmul.f32 -1.442695, %v283_v5 }
 0x1f3   :  { %851 = vpow2.f32 %v661_v7 }
 0x1f4   :  { %853 = vtanh.f32 %v361_v8 }
 0x1f5   :  { %v850_v9 = vpop.eup %849 }
 0x1f6   :  { %v367_v10 = vadd.f32 1.0, %v850_v9 }
 0x1f8   :  { %855 = vrcp.f32 %v367_v10 }
 0x1fd   :  { %v852_v11 = vpop.eup %851 }
 0x1fe   :  { %v373_v12 = vadd.f32 1.0, %v852_v11  ;;  %v854_v13 = vpop.eup %853 }
 0x200   :  { %857 = vrcp.f32 %v373_v12 }
 0x202   :  { %v856_v14 = vpop.eup %855 }
 0x203   :  { %v377_v15 = vmul.f32 %v856_v14, %v854_v13 }
 0x205   :  { %859 = vtanh.f32 %v377_v15 }
 0x20a   :  { %v858_v18 = vpop.eup %857 }
 0x20f   :  { %v860_v19 = vpop.eup %859 }
 0x210   :  { %v379_v21 = vmul.f32 %v860_v19, %v858_v18 }
 0x212   :  { %767 = vmatmul.mubr.msk.f32.vlgmr.msra.gmra.mrb[4].mxu1 %vm134_vm2, %v379_v21  ;;  %778 = vmatmul.mubr.msk.f32.vlgmr.msra.gmra.mrb[4].mxu0 %vm134_vm2, %v379_v21 }
 0x213   :  { %835 = vmatpush3.bf16.msra.mxu1 %v834_v20  ;;  %788 = vmatprep.mubr.msk.f32.mxu1 %vm926_vm0, %v927_v1 }
 0x214   :  { %836 = vmatprep.subr.bf16.mxu1 %v925_v0  ;;  %v545_v0 = vsub.s32 6, %v997_v28 }
 0x216   :  { %v546_v39 = vrot.slane %v1000_v30, %v545_v0 }
 0x217   :  { %838 = vmatpush3.bf16.msra.mxu1 %v837_v24 }
 0x21a   :  { %789 = vmatmul.mubr.msk.f32.vlgmr.msra.gmra.mrb[6].mxu1 %vm134_vm2, %v379_v21 }
 0x2e5   :  { %v457_v29 = vpop.f32.mrb[4].mxu1  ;;  %v535_v31 = vpop.f32.mrb[4].mxu0 }
 0x2e6   :  { %v458_v32 = vadd.f32 %v457_v29, %v387_v26  ;;  %v768_v34 = vpop.f32.mrb[5].mxu1  ;;  %v779_v35 = vpop.f32.mrb[5].mxu0  ;;  %v536_v1 = vadd.f32 %v535_v31, %v468_v33 }
 0x2e8   :  { %v665_v36 = vmul.f32 -1.442695, %v458_v32  ;;  %v666_v38 = vmul.f32 -1.442695, %v536_v1 }
 0x2ea   :  { %861 = vpow2.f32 %v665_v36 }
 0x2eb   :  { %863 = vpow2.f32 %v666_v38 }
 0x2ed   :  { %v613_v37 = vpop.f32.mrb[6].mxu1 }
 0x2ee   :  { %v790_v40 = vpop.f32.mrb[7].mxu1  ;;  %v614_v41 = vadd.f32 %v613_v37, %v546_v39 }
 0x2f0   :  { %865 = vtanh.f32 %v614_v41 }
 0x2f4   :  { %v862_v42 = vpop.eup %861 }
 0x2f5   :  { %v620_v43 = vadd.f32 1.0, %v862_v42  ;;  %v864_v44 = vpop.eup %863 }
 0x2f6   :  { %v626_v45 = vadd.f32 1.0, %v864_v44 }
 0x2f7   :  { %867 = vrcp.f32 %v620_v43 }
 0x2f8   :  { %869 = vrcp.f32 %v626_v45 }
 0x2fa   :  { %v866_v46 = vpop.eup %865 }
 0x301   :  { %v868_v47 = vpop.eup %867 }
 0x302   :  { %v630_v48 = vmul.f32 %v868_v47, %v866_v46  ;;  %v870_v28 = vpop.eup %869 }
 0x304   :  { %642 = vrot.lane.b32.xlu1 %v630_v48, %s928_s1  ;;  %871 = vtanh.f32 %v630_v48 }
 0x30e   :  { %v872_v49 = vpop.eup %871 }
 0x30f   :  { %v632_v50 = vmul.f32 %v872_v49, %v870_v28 }
 0x311   :  { %634 = vrot.lane.b32.xlu0 %v632_v50, %s929_s9 }
 0x315   :  { %638 = vrot.lane.b32.xlu0 %v377_v15, %s930_s10 }
 0x376   :  { %v643_v53 = vpop.permute.xlu1 %642 }
 0x383   :  { %v635_v30 = vpop.permute.xlu0 %634 }
 0x384   :  { %v645_v51 = vsel %vm134_vm2, %v379_v21, %v635_v30 }
 0x387   :  { %v639_v52 = vpop.permute.xlu0 %638 }
 0x388   :  { %v646_v54 = vsel %vm51_vm1, %v645_v51, %v639_v52 }
 0x389   :  { %v648_v55 = vsel %vm647_vm3, %v646_v54, %v643_v53 }
 0x38a   :  { %649 = vst [vmem:[%s1042_s2] sm:$0xff] %v648_v55 }
 0x38b   :  { %654 = vsyncpa [#allocation3], 1 }
 0x38c   :  { %655 = vsyncpa [#allocation5], 1 }

</bundles_post_ra>
